<compile_context>
chip_gen: v7x
topology: tpu7x:2x2x1
jax: 0.10.0
libtpu: 0.0.40
codegen_flags: <defaults>
</compile_context>

<pallas_src>
import jax
import jax.numpy as jnp
from jax import lax
from jax.experimental import pallas as pl

BN_EPS = 1e-5  # PyTorch BatchNorm1d default


def bayesian_residual_kernel(x_ref, w_ref, b_ref, gamma_ref, beta_ref, eps_ref,
                             out_ref):
    x = x_ref[...]                                            # (B, I)
    B = x_ref.shape[0]
    O = eps_ref.shape[1]

    # Single fused MXU matmul: x @ [W_mu | W_logvar] + [b_mu | b_logvar]  -> (B, 2O)
    mu_lv = jnp.dot(x, w_ref[...],
                    preferred_element_type=jnp.float32) + b_ref[...]
    mu = mu_lv[:, :O]                                         # (B, O)
    logvar = mu_lv[:, O:]                                     # (B, O)

    # reparameterize: mu + eps * exp(0.5 * logvar)   (exp lands on the EUP slot)
    std = jnp.exp(0.5 * logvar)
    z = mu + eps_ref[...] * std                               # (B, O)

    # BatchNorm1d in training mode with single-pass batch statistics:
    #   mean = E[z],  var = E[z^2] - mean^2   (biased variance, like PyTorch forward)
    inv_b = 1.0 / float(B)
    mean = jnp.sum(z, axis=0, keepdims=True) * inv_b          # (1, O)
    mean_sq = jnp.sum(z * z, axis=0, keepdims=True) * inv_b   # (1, O)
    var = mean_sq - mean * mean
    z_hat = (z - mean) * lax.rsqrt(var + BN_EPS)              # rsqrt -> EUP
    y = jnp.maximum(gamma_ref[...] * z_hat + beta_ref[...], 0.0)

    # Fused concat: torch.cat([relu(bn(z)), x], dim=1) written directly from VMEM.
    out_ref[:, :O] = y
    out_ref[:, O:] = x


def bayesian_residual_forward(x, w_mu, b_mu, w_lv, b_lv, gamma, beta, eps):
    """x: (B, I); w_*: (I, O); b_*/gamma/beta: (1, O); eps: (B, O) ~ N(0, 1).

    Returns the full forward output (B, O + I) == concat([relu(bn(z)), x], axis=1).
    """
    B, I = x.shape
    O = w_mu.shape[1]

    # Fuse the two Linear layers along the output axis (one wide matmul on the MXU).
    w_fused = jnp.concatenate([w_mu, w_lv], axis=1)           # (I, 2O)
    b_fused = jnp.concatenate([b_mu, b_lv], axis=1)           # (1, 2O)

    return pl.pallas_call(
        bayesian_residual_kernel,
        out_shape=jax.ShapeDtypeStruct((B, O + I), jnp.float32),
        in_specs=[
            pl.BlockSpec((B, I), lambda: (0, 0)),             # x
            pl.BlockSpec((I, 2 * O), lambda: (0, 0)),         # fused weight
            pl.BlockSpec((1, 2 * O), lambda: (0, 0)),         # fused bias
            pl.BlockSpec((1, O), lambda: (0, 0)),             # bn gamma
            pl.BlockSpec((1, O), lambda: (0, 0)),             # bn beta
            pl.BlockSpec((B, O), lambda: (0, 0)),             # eps (pre-sampled N(0,1))
        ],
        out_specs=pl.BlockSpec((B, O + I), lambda: (0, 0)),
    )(x, w_fused, b_fused, gamma, beta, eps)


if __name__ == "__main__":
    B, I, O = 8, 32, 32  # small shapes consistent with BayesianResidual(i=32, o=32)

    key = jax.random.PRNGKey(0)
    kx, kwm, kbm, kwl, kbl, kg, kb2, keps = jax.random.split(key, 8)

    # Deterministic parameter init (PyTorch Linear-style uniform bound 1/sqrt(I)).
    bound = 1.0 / jnp.sqrt(jnp.float32(I))
    x = jax.random.normal(kx, (B, I), dtype=jnp.float32)
    w_mu = jax.random.uniform(kwm, (I, O), jnp.float32, -bound, bound)
    b_mu = jax.random.uniform(kbm, (1, O), jnp.float32, -bound, bound)
    w_lv = jax.random.uniform(kwl, (I, O), jnp.float32, -bound, bound)
    b_lv = jax.random.uniform(kbl, (1, O), jnp.float32, -bound, bound)
    # Non-trivial BN affine params to exercise that path (PyTorch init is 1 / 0).
    gamma = 1.0 + 0.1 * jax.random.normal(kg, (1, O), dtype=jnp.float32)
    beta = 0.1 * jax.random.normal(kb2, (1, O), dtype=jnp.float32)
    # eps plays the role of torch.randn_like(std), sampled outside for determinism.
    eps = jax.random.normal(keps, (B, O), dtype=jnp.float32)

    out = bayesian_residual_forward(x, w_mu, b_mu, w_lv, b_lv, gamma, beta, eps)
    out = jax.block_until_ready(out)

    # Reference in plain JAX (same math as the PyTorch module's forward).
    mu = x @ w_mu + b_mu
    logvar = x @ w_lv + b_lv
    z = mu + eps * jnp.exp(0.5 * logvar)
    mean = jnp.mean(z, axis=0, keepdims=True)
    var = jnp.mean((z - mean) ** 2, axis=0, keepdims=True)
    y_ref = jnp.maximum(gamma * (z - mean) * lax.rsqrt(var + BN_EPS) + beta, 0.0)
    ref = jnp.concatenate([y_ref, x], axis=1)

    assert out.shape == (B, O + I)
    assert jnp.allclose(out[:, O:], x)                        # concat'd input is exact
    assert jnp.allclose(out, ref, atol=1e-5, rtol=1e-5)
    print("KERNEL_OK")
</pallas_src>

<mosaic_0001>
module attributes {stable_mosaic.version = 11 : i64} {
  func.func @bayesian_residual_kernel(%arg0: memref<8x32xf32, #tpu.memory_space<vmem>>, %arg1: memref<32x64xf32, #tpu.memory_space<vmem>>, %arg2: memref<1x64xf32, #tpu.memory_space<vmem>>, %arg3: memref<1x32xf32, #tpu.memory_space<vmem>>, %arg4: memref<1x32xf32, #tpu.memory_space<vmem>>, %arg5: memref<8x32xf32, #tpu.memory_space<vmem>>, %arg6: memref<8x64xf32, #tpu.memory_space<vmem>>) attributes {dimension_semantics = [], scalar_prefetch = 0 : i64, scratch_operands = 0 : i64, tpu.core_type = #tpu.core_type<tc>} {
    %c0 = arith.constant 0 : index
    %c0_0 = arith.constant 0 : index
    %0 = vector.load %arg0[%c0, %c0_0] : memref<8x32xf32, #tpu.memory_space<vmem>>, vector<8x32xf32>
    %c0_1 = arith.constant 0 : index
    %c0_2 = arith.constant 0 : index
    %1 = vector.load %arg1[%c0_1, %c0_2] : memref<32x64xf32, #tpu.memory_space<vmem>>, vector<32x64xf32>
    %cst = arith.constant dense<0.000000e+00> : vector<8x64xf32>
    %2 = tpu.matmul %0, %1, %cst {dimension_numbers = #tpu.dot_dimension_numbers<[1], [0], [0], [1], [0, 0, 1, 1], [], []>} : vector<8x32xf32>, vector<32x64xf32>, vector<8x64xf32> -> vector<8x64xf32>
    %c0_3 = arith.constant 0 : index
    %c0_4 = arith.constant 0 : index
    %3 = vector.load %arg2[%c0_3, %c0_4] : memref<1x64xf32, #tpu.memory_space<vmem>>, vector<1x64xf32>
    %4 = vector.broadcast %3 : vector<1x64xf32> to vector<8x64xf32>
    %5 = arith.addf %2, %4 : vector<8x64xf32>
    %6 = vector.extract_strided_slice %5 {offsets = [0, 0], sizes = [8, 32], strides = [1, 1]} : vector<8x64xf32> to vector<8x32xf32>
    %7 = vector.extract_strided_slice %5 {offsets = [0, 32], sizes = [8, 32], strides = [1, 1]} : vector<8x64xf32> to vector<8x32xf32>
    %cst_5 = arith.constant 5.000000e-01 : f32
    %8 = vector.broadcast %cst_5 : f32 to vector<8x32xf32>
    %9 = arith.mulf %8, %7 : vector<8x32xf32>
    %10 = math.exp %9 : vector<8x32xf32>
    %c0_6 = arith.constant 0 : index
    %c0_7 = arith.constant 0 : index
    %11 = vector.load %arg5[%c0_6, %c0_7] : memref<8x32xf32, #tpu.memory_space<vmem>>, vector<8x32xf32>
    %12 = arith.mulf %11, %10 : vector<8x32xf32>
    %13 = arith.addf %6, %12 : vector<8x32xf32>
    %cst_8 = arith.constant dense<0.000000e+00> : vector<32xf32>
    %14 = vector.multi_reduction <add>, %13, %cst_8 [0] : vector<8x32xf32> to vector<32xf32>
    %15 = vector.shape_cast %14 : vector<32xf32> to vector<1x32xf32>
    %cst_9 = arith.constant 1.250000e-01 : f32
    %16 = vector.broadcast %cst_9 : f32 to vector<1x32xf32>
    %17 = arith.mulf %15, %16 : vector<1x32xf32>
    %18 = arith.mulf %13, %13 : vector<8x32xf32>
    %cst_10 = arith.constant dense<0.000000e+00> : vector<32xf32>
    %19 = vector.multi_reduction <add>, %18, %cst_10 [0] : vector<8x32xf32> to vector<32xf32>
    %20 = vector.shape_cast %19 : vector<32xf32> to vector<1x32xf32>
    %cst_11 = arith.constant 1.250000e-01 : f32
    %21 = vector.broadcast %cst_11 : f32 to vector<1x32xf32>
    %22 = arith.mulf %20, %21 : vector<1x32xf32>
    %23 = arith.mulf %17, %17 : vector<1x32xf32>
    %24 = arith.subf %22, %23 : vector<1x32xf32>
    %25 = vector.broadcast %17 : vector<1x32xf32> to vector<8x32xf32>
    %26 = arith.subf %13, %25 : vector<8x32xf32>
    %cst_12 = arith.constant 9.99999974E-6 : f32
    %27 = vector.broadcast %cst_12 : f32 to vector<1x32xf32>
    %28 = arith.addf %24, %27 : vector<1x32xf32>
    %29 = math.rsqrt %28 : vector<1x32xf32>
    %30 = vector.broadcast %29 : vector<1x32xf32> to vector<8x32xf32>
    %31 = arith.mulf %26, %30 : vector<8x32xf32>
    %c0_13 = arith.constant 0 : index
    %c0_14 = arith.constant 0 : index
    %32 = vector.load %arg3[%c0_13, %c0_14] : memref<1x32xf32, #tpu.memory_space<vmem>>, vector<1x32xf32>
    %33 = vector.broadcast %32 : vector<1x32xf32> to vector<8x32xf32>
    %34 = arith.mulf %33, %31 : vector<8x32xf32>
    %c0_15 = arith.constant 0 : index
    %c0_16 = arith.constant 0 : index
    %35 = vector.load %arg4[%c0_15, %c0_16] : memref<1x32xf32, #tpu.memory_space<vmem>>, vector<1x32xf32>
    %36 = vector.broadcast %35 : vector<1x32xf32> to vector<8x32xf32>
    %37 = arith.addf %34, %36 : vector<8x32xf32>
    %cst_17 = arith.constant 0.000000e+00 : f32
    %38 = vector.broadcast %cst_17 : f32 to vector<8x32xf32>
    %39 = arith.maximumf %37, %38 : vector<8x32xf32>
    %c0_18 = arith.constant 0 : index
    %c0_19 = arith.constant 0 : index
    %40 = vector.load %arg6[%c0_18, %c0_19] : memref<8x64xf32, #tpu.memory_space<vmem>>, vector<8x32xf32>
    tpu.vector_store %arg6[%c0_18, %c0_19], %39 {strides = array<i32>} : memref<8x64xf32, #tpu.memory_space<vmem>>, vector<8x32xf32>,
    %c0_20 = arith.constant 0 : index
    %c32 = arith.constant 32 : index
    %41 = vector.load %arg6[%c0_20, %c32] : memref<8x64xf32, #tpu.memory_space<vmem>>, vector<8x32xf32>
    tpu.vector_store %arg6[%c0_20, %c32], %0 {strides = array<i32>} : memref<8x64xf32, #tpu.memory_space<vmem>>, vector<8x32xf32>,
    return
  }
}

</mosaic_0001>

<bundles_post_ra>
// kernel: tpu_custom_call.1
= control target key start
LH: loop header
LB: loop body
LE: loop exit
PB: predicated region body
PF: predicated region fallthrough
CT: control target
= control target key end

     0   :  { %11 = vsyncpa [#allocation3], 0  ;;  %s424_s0 = inlined_call_operand.hbm [shape: f32[8,32], index: 0, kind: input, shape index: {}]   ;;  %s425_s1 = inlined_call_operand.hbm [shape: f32[32,64], index: 1, kind: input, shape index: {}]   ;;  %s426_s2 = inlined_call_operand.vmem [shape: f32[1,64], index: 2, kind: input, shape index: {}]   ;;  %s427_s3 = inlined_call_operand.vmem [shape: f32[1,32], index: 3, kind: input, shape index: {}]   ;;  %s428_s4 = inlined_call_operand.vmem [shape: f32[1,32], index: 4, kind: input, shape index: {}]   ;;  %s429_s5 = inlined_call_operand.vmem [shape: f32[8,32], index: 5, kind: input, shape index: {}]   ;;  %s430_s6 = inlined_call_operand.hbm [shape: f32[8,64], index: 6, kind: output, shape index: {}]  }
   0x1   :  { %12 = vsyncpa [#allocation6], 0 }
   0x2   :  { %13 = vsyncpa [#allocation4], 0  ;;  %s320_s21 = smov [#allocation2]   ;;  %s321_s23 = smov [#allocation5]  }
   0x3   :  { %s20_s22 = sshll.u32 %s320_s21, 4  ;;  %s29_s24 = sshll.u32 %s321_s23, 4  ;;  %s21_s22 = int_to_ptr.vmem [resolvable:$true] %s20_s22  ;;  %s365_s24 = int_to_ptr.vmem [resolvable:$true] %s29_s24 }
   0x4   :  { %s248_s27 = scalar_lea.hbm %s424_s0, 128 }
   0x5   :  { %p249_p0 = scmp.ne.s32.totalorder %s424_s0, %s248_s27  ;;  %p252_p1 = scmp.lt.u32.totalorder %s248_s27, %s424_s0 }
   0x7   :  { %p254_p2 = pnand %p252_p1, %p249_p0 }
   0x9   :  { %257 = shalt.err (!%p254_p2)
}
   0xa   :  { %s258_s8 = scalar_lea.vmem %s21_s22, 128  ;;  %p263_p4 = scmp.lt.s32.totalorder %s21_s22, %s21_s22 }
   0xb   :  { %p259_p3 = scmp.ne.s32.totalorder %s21_s22, %s258_s8  ;;  %p264_p5 = scmp.lt.s32.totalorder %s258_s8, %s258_s8 }
   0xd   :  { %p265_p6 = por %p264_p5, %p263_p4 }
   0xf   :  { %p266_p7 = pnand %p265_p6, %p259_p3 }
  0x11   :  { %269 = shalt.err (!%p266_p7)
}
  0x12   :  { %23 = dma.hbm_to_vmem [thread:$0]  %s424_s0, 128, %s21_s22, [#allocation3]  }
  0x13   :  { %s270_s13 = scalar_lea.hbm %s425_s1, 512 }
  0x14   :  { %p271_p8 = scmp.ne.s32.totalorder %s425_s1, %s270_s13  ;;  %p274_p9 = scmp.lt.u32.totalorder %s270_s13, %s425_s1 }
  0x16   :  { %p276_p10 = pnand %p274_p9, %p271_p8 }
  0x18   :  { %279 = shalt.err (!%p276_p10)
}
  0x19   :  { %s280_s18 = scalar_lea.vmem %s365_s24, 512  ;;  %p285_p12 = scmp.lt.s32.totalorder %s365_s24, %s365_s24 }
  0x1a   :  { %p281_p11 = scmp.ne.s32.totalorder %s365_s24, %s280_s18  ;;  %p286_p13 = scmp.lt.s32.totalorder %s280_s18, %s280_s18 }
  0x1c   :  { %p287_p0 = por %p286_p13, %p285_p12 }
  0x1e   :  { %p288_p1 = pnand %p287_p0, %p281_p11 }
  0x20   :  { %291 = shalt.err (!%p288_p1)
}
  0x21   :  { %s322_s0 = smov 128   ;;  %s323_s19 = smov 8  }
  0x22   :  { %35 = dma.hbm_to_vmem [thread:$0]  %s425_s1, 512, %s365_s24, [#allocation6], %s322_s0, %s322_s0, %s323_s19  }
  0x23   :  { %314 = dma.done.wait [#allocation3], 128  }
  0x24   :  { %315 = vsyncadd [#allocation3], 4294967168 }
  0x25   :  { %316 = dma.done.wait [#allocation6], 512  }
  0x26   :  { %317 = vsyncadd [#allocation6], 4294966784  ;;  %v324_v0 = vmov 0.0|0.0   ;;  %vm325_vm0 = vmmov 0   ;;  %v326_v1 = vmov 0.0   ;;  %v51_v2 = vld [vmem:[#allocation5] sm:$0xff] }
  0x27   :  { %228 = vmatprep.subr.bf16.mxu0 %v324_v0  ;;  %225 = vmatprep.mubr.msk.f32.mxu0 %vm325_vm0, %v326_v1  ;;  %v52_v3 = vld [vmem:[#allocation5 + $0x8] sm:$0xff]  ;;  %v53_v4 = vld [vmem:[#allocation5 + $0x10] sm:$0xff]  ;;  %v54_v6 = vld [vmem:[#allocation5 + $0x18] sm:$0xff]  ;;  %vm62_vm1 = vcmask 261120   ;;  %s327_s23 = smov 96   ;;  %s328_s24 = smov 32  }
  0x28   :  { %v229_v5 = vpack.c.bf16 %v52_v3, %v51_v2  ;;  %v232_v7 = vpack.c.bf16 %v54_v6, %v53_v4  ;;  %v50_v8 = vld [vmem:[#allocation2] sm:$0xff]  ;;  %s329_s29 = smov [#allocation7]   ;;  %vm190_vm2 = vcmask 523520  }
  0x29   :  { %v208_v9 = vld [vmem:[%s426_s2] ss:$0 sm:$0xff]  ;;  %s198_s30 = sshll.u32 %s329_s29, 4  ;;  %s199_s30 = int_to_ptr.vmem [resolvable:$true] %s198_s30 }
  0x2a   :  { %230 = vmatpush3.bf16.msra.mxu0 %v229_v5  ;;  %v139_v16 = vld [vmem:[%s429_s5] sm:$0xff]  ;;  %s292_s7 = scalar_lea.vmem %s199_s30, 128  ;;  %p297_p3 = scmp.lt.s32.totalorder %s199_s30, %s199_s30 }
  0x2b   :  { %231 = vmatprep.subr.bf16.mxu0 %v324_v0  ;;  %v210_v42 = vld [vmem:[%s427_s3] ss:$0 sm:$0xff]  ;;  %p293_p2 = scmp.ne.s32.totalorder %s199_s30, %s292_s7  ;;  %p298_p4 = scmp.lt.s32.totalorder %s292_s7, %s292_s7 }
  0x2c   :  { %v211_v44 = vld [vmem:[%s428_s4] ss:$0 sm:$0xff] }
  0x2d   :  { %p299_p5 = por %p298_p4, %p297_p3 }
  0x2e   :  { %233 = vmatpush3.bf16.msra.mxu0 %v232_v7 }
  0x2f   :  { %p300_p6 = pnand %p299_p5, %p293_p2 }
  0x31   :  { %226 = vmatmul.mubr.msk.f32.vlgmr.msra.gmra.mrb[0].mxu0 %vm62_vm1, %v50_v8 }
 0x104   :  { %v132_v10 = vpop.f32.mrb[0].mxu0 }
 0x105   :  { %v133_v11 = vadd.f32 %v208_v9, %v132_v10  ;;  %v227_v12 = vpop.f32.mrb[1].mxu0 }
 0x107   :  { %v136_v13 = vmul.f32 0.5, %v133_v11 }
 0x109   :  { %v137_v14 = vmul.f32 1.442695, %v136_v13 }
 0x10b   :  { %244 = vpow2.f32 %v137_v14 }
 0x115   :  { %v245_v15 = vpop.eup %244 }
 0x116   :  { %141 = vrot.lane.b32.xlu0 %v245_v15, %s327_s23 }
 0x11a   :  { %187 = vrot.lane.b32.xlu0 %v50_v8, %s328_s24 }
 0x188   :  { %v142_v17 = vpop.permute.xlu0 %141 }
 0x189   :  { %v144_v18 = vmul.f32 %v142_v17, %v139_v16 }
 0x18b   :  { %v145_v19 = vadd.f32 %v144_v18, %v133_v11 }
 0x18c   :  { %v188_v47 = vpop.permute.xlu0 %187 }
 0x18d   :  { %v146_v20 = vsel %vm62_vm1, %v145_v19, 0.0  ;;  %v154_v21 = vmul.f32 %v145_v19, %v145_v19 }
 0x18e   :  { %v147_v22 = vrot.slane %v146_v20, 4 }
 0x18f   :  { %v155_v23 = vsel %vm62_vm1, %v154_v21, 0.0 }
 0x190   :  { %v148_v24 = vadd.f32 %v147_v22, %v146_v20  ;;  %v156_v25 = vrot.slane %v155_v23, 4 }
 0x192   :  { %v149_v26 = vrot.slane %v148_v24, 2  ;;  %v157_v27 = vadd.f32 %v156_v25, %v155_v23 }
 0x194   :  { %v150_v28 = vadd.f32 %v149_v26, %v148_v24  ;;  %v158_v29 = vrot.slane %v157_v27, 2 }
 0x196   :  { %v151_v30 = vrot.slane %v150_v28, 1  ;;  %v159_v31 = vadd.f32 %v158_v29, %v157_v27 }
 0x198   :  { %v152_v32 = vadd.f32 %v151_v30, %v150_v28  ;;  %v160_v33 = vrot.slane %v159_v31, 1 }
 0x19a   :  { %v153_v34 = vmul.f32 0.125, %v152_v32  ;;  %v161_v35 = vadd.f32 %v160_v33, %v159_v31 }
 0x19c   :  { %v162_v36 = vmul.f32 0.125, %v161_v35  ;;  %v163_v37 = vmul.f32 %v153_v34, %v153_v34  ;;  %v165_v40 = vsub.f32 %v145_v19, %v153_v34 }
 0x19e   :  { %v164_v38 = vsub.f32 %v162_v36, %v163_v37 }
 0x1a0   :  { %v166_v39 = vadd.f32 1e-05, %v164_v38 }
 0x1a2   :  { %246 = vrsqrt.f32 %v166_v39 }
 0x1ac   :  { %v247_v41 = vpop.eup %246 }
 0x1ad   :  { %v168_v43 = vmul.f32 %v247_v41, %v165_v40 }
 0x1af   :  { %v176_v45 = vmul.f32 %v210_v42, %v168_v43 }
 0x1b1   :  { %v184_v46 = vadd.f32 %v211_v44, %v176_v45 }
 0x1b3   :  { %v185_v48 = vmax.f32 %v184_v46, 0.0 }
 0x1b5   :  { %186 = vst.msk [vmem:[#allocation7] sm:$0xff] %vm62_vm1, %v185_v48 }
 0x1b6   :  { %191 = vst.msk [vmem:[#allocation7] sm:$0xff] %vm190_vm2, %v188_v47 }
 0x1b7   :  { %303 = shalt.err (!%p300_p6)
}
 0x1b8   :  { %s304_s8 = scalar_lea.hbm %s430_s6, 128 }
 0x1b9   :  { %p305_p7 = scmp.ne.s32.totalorder %s430_s6, %s304_s8  ;;  %p308_p8 = scmp.lt.u32.totalorder %s304_s8, %s430_s6 }
 0x1bb   :  { %p310_p9 = pnand %p308_p8, %p305_p7 }
 0x1bd   :  { %313 = shalt.err (!%p310_p9)
}
 0x1be   :  { %201 = dma.vmem_to_hbm [thread:$0]  %s199_s30, 128, %s430_s6, [#allocation4]  }
 0x1bf   :  { %318 = dma.done.wait [#allocation4], 128  }
 0x1c0   :  { %319 = vsyncadd [#allocation4], 4294967168 }
 0x1c1   :  { %205 = vsyncpa [#allocation3], 1 }
 0x1c2   :  { %206 = vsyncpa [#allocation6], 1 }
 0x1c3   :  { %207 = vsyncpa [#allocation4], 1 }

</bundles_post_ra>
